<compile_context>
chip_gen: v7x
topology: tpu7x:2x2x1
jax: 0.10.0
libtpu: 0.0.40
codegen_flags: <defaults>
</compile_context>

<pallas_src>
import jax
import jax.numpy as jnp
from jax.experimental import pallas as pl
from jax.experimental.pallas import tpu as pltpu


def _round_up(x: int, m: int) -> int:
    return (x + m - 1) // m * m


def _matmul_bias_kernel(x_ref, w_ref, b_ref, o_ref, acc_ref):
    """Tiled matmul with K-accumulation; bias added on the last K step only."""
    k = pl.program_id(2)

    @pl.when(k == 0)
    def _():
        acc_ref[...] = jnp.zeros_like(acc_ref)

    acc_ref[...] += jnp.dot(
        x_ref[...], w_ref[...], preferred_element_type=jnp.float32
    )

    @pl.when(k == pl.num_programs(2) - 1)
    def _():
        o_ref[...] = (acc_ref[...] + b_ref[...]).astype(o_ref.dtype)


def normalized_model(x, mean, std, w, b, *, tm=None, tn=128, tk=512):
    """x: (N, C, H, W) f32; mean/std: (C, 1, 1) f32 (PyTorch-broadcastable);
    w: (C*H*W, OUT) f32; b: (OUT,) f32.  Returns (N, OUT) f32:
        ((x - mean) / std).reshape(N, -1) @ w + b
    """
    N, C, H, W = x.shape
    K = C * H * W
    OUT = w.shape[1]

    # --- Wrapper glue: fold normalization into the linear head (fp-reorder only).
    mean_full = (
        jnp.broadcast_to(mean.reshape(C, 1, 1), (C, H, W)).reshape(K).astype(jnp.float32)
    )
    std_full = (
        jnp.broadcast_to(std.reshape(C, 1, 1), (C, H, W)).reshape(K).astype(jnp.float32)
    )
    inv_std = 1.0 / std_full                                   # once, in the wrapper
    w32 = w.astype(jnp.float32)
    w_folded = w32 * inv_std[:, None]                          # (K, OUT)
    b_folded = b.astype(jnp.float32) - (mean_full * inv_std) @ w32   # (OUT,)

    x_flat = x.reshape(N, K).astype(jnp.float32)

    # --- Tile sizes: sublane multiple of 8, lane multiple of 128.
    if tm is None:
        tm = min(128, _round_up(N, 8))
    tn = min(tn, _round_up(OUT, 128))
    tk = min(tk, _round_up(K, 128))

    Mp = _round_up(N, tm)
    Kp = _round_up(K, tk)
    Op = _round_up(OUT, tn)

    # --- Zero-pad to tile multiples (padded K rows/cols contribute zero).
    x_p = jnp.zeros((Mp, Kp), jnp.float32).at[:N, :K].set(x_flat)
    w_p = jnp.zeros((Kp, Op), jnp.float32).at[:K, :OUT].set(w_folded)
    b_p = jnp.zeros((1, Op), jnp.float32).at[0, :OUT].set(b_folded)

    grid = (Mp // tm, Op // tn, Kp // tk)

    out_padded = pl.pallas_call(
        _matmul_bias_kernel,
        out_shape=jax.ShapeDtypeStruct((Mp, Op), jnp.float32),
        grid_spec=pltpu.PrefetchScalarGridSpec(
            num_scalar_prefetch=0,
            grid=grid,
            in_specs=[
                pl.BlockSpec((tm, tk), lambda i, j, k: (i, k)),   # x tile
                pl.BlockSpec((tk, tn), lambda i, j, k: (k, j)),   # folded-w tile
                pl.BlockSpec((1, tn), lambda i, j, k: (0, j)),    # folded-bias tile
            ],
            out_specs=pl.BlockSpec((tm, tn), lambda i, j, k: (i, j)),
            scratch_shapes=[pltpu.VMEM((tm, tn), jnp.float32)],
        ),
        compiler_params=pltpu.CompilerParams(
            dimension_semantics=("parallel", "parallel", "arbitrary"),
            vmem_limit_bytes=64 << 20,
        ),
    )(x_p, w_p, b_p)

    # Slice off M/OUT padding.
    return out_padded[:N, :OUT]


if __name__ == "__main__":
    key = jax.random.PRNGKey(0)
    kx, kw, kb = jax.random.split(key, 3)

    N, C, H, W = 2, 4, 16, 16
    OUT = 10
    K = C * H * W

    x = jax.random.normal(kx, (N, C, H, W), dtype=jnp.float32)

    # Deterministic dataset statistics (per-channel), PyTorch-broadcastable (C,1,1).
    mean = jnp.array([0.485, 0.456, 0.406, 0.500], dtype=jnp.float32).reshape(C, 1, 1)
    std = jnp.array([0.229, 0.224, 0.225, 0.250], dtype=jnp.float32).reshape(C, 1, 1)

    # Deterministic stand-in model parameters.
    w = jax.random.normal(kw, (K, OUT), dtype=jnp.float32) * 0.02
    b = jax.random.normal(kb, (OUT,), dtype=jnp.float32) * 0.1

    out = normalized_model(x, mean, std, w, b)
    out = jax.block_until_ready(out)

    # Pure-JAX reference for correctness (original, unfolded semantics).
    xn_ref = (x - mean.reshape(1, C, 1, 1)) / std.reshape(1, C, 1, 1)
    ref = xn_ref.reshape(N, K) @ w + b.reshape(1, OUT)
    assert out.shape == (N, OUT)
    assert jnp.allclose(out, ref, atol=1e-4, rtol=1e-4), "mismatch vs reference"

    print("KERNEL_OK")
</pallas_src>

<mosaic_0001>
module attributes {stable_mosaic.version = 11 : i64} {
  func.func @_matmul_bias_kernel(%arg0: i32, %arg1: i32, %arg2: i32, %arg3: memref<8x512xf32, #tpu.memory_space<vmem>>, %arg4: memref<512x128xf32, #tpu.memory_space<vmem>>, %arg5: memref<1x128xf32, #tpu.memory_space<vmem>>, %arg6: memref<8x128xf32, #tpu.memory_space<vmem>>, %arg7: memref<8x128xf32, #tpu.memory_space<vmem>>) attributes {dimension_semantics = [#tpu.dimension_semantics<parallel>, #tpu.dimension_semantics<parallel>, #tpu.dimension_semantics<arbitrary>], iteration_bounds = array<i64: 1, 1, 2>, scalar_prefetch = 0 : i64, scratch_operands = 1 : i64, tpu.core_type = #tpu.core_type<tc>, window_params = [{transform_indices = @transform_0, window_bounds = array<i64: 8, 512>}, {transform_indices = @transform_1, window_bounds = array<i64: 512, 128>}, {transform_indices = @transform_2, window_bounds = array<i64: 1, 128>}, {transform_indices = @transform_3, window_bounds = array<i64: 8, 128>}]} {
    %c0_i32 = arith.constant 0 : i32
    %0 = arith.cmpi eq, %arg2, %c0_i32 : i32
    %1 = arith.extui %0 : i1 to i32
    %c0_i32_0 = arith.constant 0 : i32
    %2 = arith.cmpi ne, %1, %c0_i32_0 : i32
    scf.if %2 {
      %cst_9 = arith.constant 0.000000e+00 : f32
      %12 = vector.broadcast %cst_9 : f32 to vector<8x128xf32>
      %c0_10 = arith.constant 0 : index
      %c0_11 = arith.constant 0 : index
      %13 = vector.load %arg7[%c0_10, %c0_11] : memref<8x128xf32, #tpu.memory_space<vmem>>, vector<8x128xf32>
      tpu.vector_store %arg7[%c0_10, %c0_11], %12 {strides = array<i32>} : memref<8x128xf32, #tpu.memory_space<vmem>>, vector<8x128xf32>,
    } else {
    }
    %c0 = arith.constant 0 : index
    %c0_1 = arith.constant 0 : index
    %3 = vector.load %arg7[%c0, %c0_1] : memref<8x128xf32, #tpu.memory_space<vmem>>, vector<8x128xf32>
    %c0_2 = arith.constant 0 : index
    %c0_3 = arith.constant 0 : index
    %4 = vector.load %arg3[%c0_2, %c0_3] : memref<8x512xf32, #tpu.memory_space<vmem>>, vector<8x512xf32>
    %c0_4 = arith.constant 0 : index
    %c0_5 = arith.constant 0 : index
    %5 = vector.load %arg4[%c0_4, %c0_5] : memref<512x128xf32, #tpu.memory_space<vmem>>, vector<512x128xf32>
    %cst = arith.constant dense<0.000000e+00> : vector<8x128xf32>
    %6 = tpu.matmul %4, %5, %cst {dimension_numbers = #tpu.dot_dimension_numbers<[1], [0], [0], [1], [0, 0, 1, 1], [], []>} : vector<8x512xf32>, vector<512x128xf32>, vector<8x128xf32> -> vector<8x128xf32>
    %7 = arith.addf %3, %6 : vector<8x128xf32>
    %c0_6 = arith.constant 0 : index
    %c0_7 = arith.constant 0 : index
    %8 = vector.load %arg7[%c0_6, %c0_7] : memref<8x128xf32, #tpu.memory_space<vmem>>, vector<8x128xf32>
    tpu.vector_store %arg7[%c0_6, %c0_7], %7 {strides = array<i32>} : memref<8x128xf32, #tpu.memory_space<vmem>>, vector<8x128xf32>,
    %c1_i32 = arith.constant 1 : i32
    %9 = arith.cmpi eq, %arg2, %c1_i32 : i32
    %10 = arith.extui %9 : i1 to i32
    %c0_i32_8 = arith.constant 0 : i32
    %11 = arith.cmpi ne, %10, %c0_i32_8 : i32
    scf.if %11 {
      %c0_9 = arith.constant 0 : index
      %c0_10 = arith.constant 0 : index
      %12 = vector.load %arg7[%c0_9, %c0_10] : memref<8x128xf32, #tpu.memory_space<vmem>>, vector<8x128xf32>
      %c0_11 = arith.constant 0 : index
      %c0_12 = arith.constant 0 : index
      %13 = vector.load %arg5[%c0_11, %c0_12] : memref<1x128xf32, #tpu.memory_space<vmem>>, vector<1x128xf32>
      %14 = vector.broadcast %13 : vector<1x128xf32> to vector<8x128xf32>
      %15 = arith.addf %12, %14 : vector<8x128xf32>
      %c0_13 = arith.constant 0 : index
      %c0_14 = arith.constant 0 : index
      %16 = vector.load %arg6[%c0_13, %c0_14] : memref<8x128xf32, #tpu.memory_space<vmem>>, vector<8x128xf32>
      tpu.vector_store %arg6[%c0_13, %c0_14], %15 {strides = array<i32>} : memref<8x128xf32, #tpu.memory_space<vmem>>, vector<8x128xf32>,
    } else {
    }
    return
  }
  func.func @transform_0(%arg0: i32, %arg1: i32, %arg2: i32) -> (i32, i32) {
    %c0_i32 = arith.constant 0 : i32
    return %arg0, %arg2 : i32, i32
  }
  func.func @transform_1(%arg0: i32, %arg1: i32, %arg2: i32) -> (i32, i32) {
    %c0_i32 = arith.constant 0 : i32
    return %arg2, %arg1 : i32, i32
  }
  func.func @transform_2(%arg0: i32, %arg1: i32, %arg2: i32) -> (i32, i32) {
    %c0_i32 = arith.constant 0 : i32
    %c0_i32_0 = arith.constant 0 : i32
    return %c0_i32, %arg1 : i32, i32
  }
  func.func @transform_3(%arg0: i32, %arg1: i32, %arg2: i32) -> (i32, i32) {
    %c0_i32 = arith.constant 0 : i32
    return %arg0, %arg1 : i32, i32
  }
}

</mosaic_0001>

<bundles_post_ra>
// kernel: tpu_custom_call.1
= control target key start
LH: loop header
LB: loop body
LE: loop exit
PB: predicated region body
PF: predicated region fallthrough
CT: control target
= control target key end

     0   :  { %8 = vsyncpa [#allocation4], 0  ;;  %s1368_s0 = inlined_call_operand.hbm [shape: f32[8,1024], index: 0, kind: input, shape index: {}]   ;;  %s1369_s1 = inlined_call_operand.hbm [shape: f32[1024,128], index: 1, kind: input, shape index: {}]   ;;  %s1370_s2 = inlined_call_operand.hbm [shape: f32[1,128], index: 2, kind: input, shape index: {}]   ;;  %s1371_s3 = inlined_call_operand.hbm [shape: f32[8,128], index: 3, kind: output, shape index: {}]  }
   0x1   :  { %10 = vsyncpa [#allocation4 + $0x1], 0 }
   0x2   :  { %11 = vsyncpa [#allocation7], 0 }
   0x3   :  { %13 = vsyncpa [#allocation7 + $0x1], 0 }
   0x4   :  { %14 = vsyncpa [#allocation5], 0  ;;  %s1056_s12 = smov 0   ;;  %s1058_s13 = smov 0  }
   0x5   :  { %s1060_s14 = smov 0   ;;  %s1062_s15 = smov 0  }
   0x6   :  { %s1064_s16 = smov 0   ;;  %s1066_s17 = smov 0  }
   0x7 LB: > { %s1085_s18 = sadd.s32 4294967295, %s1027_s17   ;;  %s48_s19 = sadd.s32 1, %s1015_s14  ;;  %s1027_s17 = sphi %s1066_s17, %s20_s17   ;;  %s1023_s16 = sphi %s1064_s16, %s1392_s16   ;;  %s1019_s15 = sphi %s1062_s15, %s1391_s15   ;;  %s1015_s14 = sphi %s1060_s14, %s1390_s14   ;;  %s1011_s13 = sphi %s1058_s13, %s1389_s13   ;;  %s1007_s12 = sphi %s1056_s12, %s1388_s12  }
   0x8   : > { %p55_p0 = scmp.ne.s32.totalorder %s1015_s14, %s1011_s13  ;;  %p61_p1 = scmp.ne.s32.totalorder %s1011_s13, %s1007_s12 }
   0x9   : > { %p1372_p2 = scmp.eq.s32.totalorder %s1085_s18, 0  ;;  %p614_p3 = scmp.ge.s32.totalorder %s1027_s17, 1 }
   0xa   : > { %p154_p4 = scmp.lt.s32.totalorder %s1027_s17, 3  ;;  %s1029_s22 = smov [#allocation8]  }
   0xb   : > { %p1096_p5 = por %p1372_p2, %p61_p1  ;;  %s169_s23 = sshll.u32 %s1029_s22, 4  ;;  %s170_s23 = int_to_ptr.vmem [resolvable:$true] %s169_s23 }
   0xc   : > { %p1100_p6 = pnand %p614_p3, %p154_p4  ;;  %p56_p8 = scmp.eq.s32.totalorder %s1027_s17, 0 }
   0xd   : > { %s1375_s20 = scalar_select %p1096_p5, 1, 0 }
   0xe   : > { %s1376_s21 = scalar_select %p1100_p6, 1, 0 }
   0xf   : > { %p782_p7 = pneg %p1100_p6  ;;  %s32_s25 = sadd.s32 1, %s1023_s16 }
  0x10   : > { %p1114_p10 = scmp.ge.s32.totalorder %s32_s25, 2  ;;  %p1121_p11 = por %p56_p8, %p55_p0 }
  0x11   : > { %p1109_p9 = pnand %p782_p7, %p1372_p2  ;;  %s851_s30 = scalar_lea.hbm %s1370_s2, 16 }
  0x12   : > { %s1378_s26 = scalar_select %p1114_p10, 1, 0 }
  0x13   : > { %s1379_s27 = scalar_select %p1121_p11, 1, 0 }
  0x14   : > { %p852_p13 = scmp.ne.s32.totalorder %s1370_s2, %s851_s30  ;;  %p853_p1 = pneg %p1109_p9 }
  0x15   : > { %p858_p0 = scmp.lt.u32.totalorder %s851_s30, %s1370_s2 }
  0x16   : > { %p854_p3 = pnand %p853_p1, %p852_p13 }
  0x18   : > { %p855_p4 = pneg %p854_p3 }
  0x1a   : > { %p860_p7 = pnand %p858_p0, %p855_p4 }
  0x1c   : > { %863 = shalt.err (!%p860_p7)
}
  0x1d   : > { %s864_s8 = scalar_lea.vmem %s170_s23, 16  ;;  %s871_s9 = scalar_lea.vmem %s170_s23, 32 }
  0x1e   : > { %p865_p8 = scmp.ne.s32.totalorder %s170_s23, %s864_s8  ;;  %p872_p5 = scmp.lt.s32.totalorder %s170_s23, %s170_s23 }
  0x1f   : > { %p873_p6 = scmp.lt.s32.totalorder %s871_s9, %s864_s8 }
  0x20   : > { %p867_p2 = pnand %p865_p8, %p853_p1 }
  0x21   : > { %p874_p11 = por %p873_p6, %p872_p5 }
  0x22   : > { %p868_p12 = pneg %p867_p2 }
  0x24   : > { %p875_p10 = pnand %p874_p11, %p868_p12 }
  0x26   : > { %878 = shalt.err (!%p875_p10)
}
  0x27   : > { %785 = dma.hbm_to_vmem [thread:$0]  (!%p1109_p9), %s1370_s2, 16, %s170_s23, [#allocation7]  }
  0x28   : > { %p1380_p2 = scmp.ne.s32.totalorder %s1378_s26, 0  ;;  %s1147_s12 = sand.u32 1, %s1015_s14  }
  0x29   : > { %s634_s22 = sshll.u32 %s1023_s16, 9  ;;  %s617_s28 = sshll.u32 %s1147_s12, 5 }
  0x2a   : > { %s1394_s25 = smov (%p1380_p2, %s32_s25), 0  ;;  %s1156_s4 = scalar_lea.hbm %s1368_s0, %s634_s22 }
  0x2b   : > { %s44_s24 = ssub.s32 %s1023_s16, %s1394_s25  ;;  %s184_s26 = scalar_lea.vmem [#allocation3], %s617_s28 }
  0x2c   : > { %p46_p5 = scmp.eq.s32.totalorder %s44_s24, 0  ;;  %s194_s5 = sshll.u32 %s184_s26, 4  ;;  %s1171_s5 = int_to_ptr.vmem [resolvable:$true] %s194_s5 }
  0x2d   : > { %p1381_p6 = scmp.ne.s32.totalorder %s1379_s27, 0  ;;  %p1382_p9 = scmp.lt.s32.totalorder %s1027_s17, 2 }
  0x2e   : > { %s1161_s23 = scalar_select %p46_p5, %s1015_s14, %s48_s19  }
  0x2f   : > { %p1167_p10 = pnand %p1382_p9, %p1381_p6  ;;  %s620_s7 = sshll.u32 %s1147_s12, 9 }
  0x30   : > { %s181_s8 = scalar_lea.sflag [#allocation4], %s1147_s12  ;;  %s879_s9 = scalar_lea.hbm %s1156_s4, 512 }
  0x31   : > { %p880_p11 = scmp.ne.s32.totalorder %s1156_s4, %s879_s9  ;;  %p881_p12 = pneg %p1167_p10 }
  0x32   : > { %s884_s10 = scalar_lea.hbm %s1368_s0, 1024  ;;  %p885_p3 = scmp.lt.u32.totalorder %s1156_s4, %s1368_s0 }
  0x33   : > { %p882_p13 = pnand %p881_p12, %p880_p11  ;;  %p886_p4 = scmp.lt.u32.totalorder %s884_s10, %s879_s9 }
  0x34   : > { %p888_p7 = scmp.lt.u32.totalorder %s879_s9, %s1156_s4 }
  0x35   : > { %p883_p1 = pneg %p882_p13  ;;  %p887_p0 = por %p886_p4, %p885_p3 }
  0x37   : > { %p889_p8 = por %p888_p7, %p887_p0 }
  0x39   : > { %p890_p2 = pnand %p889_p8, %p883_p1 }
  0x3b   : > { %893 = shalt.err (!%p890_p2)
}
  0x3c   : > { %s894_s24 = scalar_lea.vmem %s1171_s5, 512  ;;  %s1030_s28 = smov [#allocation3]  }
  0x3d   : > { %p895_p5 = scmp.ne.s32.totalorder %s1171_s5, %s894_s24  ;;  %s899_s29 = sshll.u32 %s1030_s28, 4  ;;  %s900_s29 = int_to_ptr.vmem [resolvable:$false] %s899_s29 }
  0x3e   : > { %s901_s30 = scalar_lea.vmem %s900_s29, 1024  ;;  %p902_p11 = scmp.lt.s32.totalorder %s1171_s5, %s900_s29 }
  0x3f   : > { %p897_p6 = pnand %p895_p5, %p881_p12  ;;  %p903_p13 = scmp.lt.s32.totalorder %s901_s30, %s894_s24 }
  0x41   : > { %p898_p9 = pneg %p897_p6  ;;  %p904_p3 = por %p903_p13, %p902_p11 }
  0x43   : > { %p905_p4 = pnand %p904_p3, %p898_p9 }
  0x45   : > { %908 = shalt.err (!%p905_p4)
}
  0x46   : > { %789 = dma.hbm_to_vmem [thread:$0]  (!%p1167_p10), %s1156_s4, 512, %s1171_s5, %s181_s8  }
  0x47   : > { %s635_s26 = sshll.u32 %s1023_s16, 13  ;;  %s205_s9 = scalar_lea.vmem [#allocation6], %s620_s7 }
  0x48   : > { %s213_s19 = sshll.u32 %s205_s9, 4  ;;  %s201_s27 = sand.u32 1, %s1027_s17   ;;  %s1203_s19 = int_to_ptr.vmem [resolvable:$true] %s213_s19 }
  0x49   : > { %s1209_s22 = scalar_lea.hbm %s1369_s1, %s635_s26  ;;  %s1211_s24 = scalar_lea.sflag [#allocation7], %s201_s27 }
  0x4a   : > { %s909_s28 = scalar_lea.hbm %s1209_s22, 8192  ;;  %s914_s5 = scalar_lea.hbm %s1369_s1, 16384 }
  0x4b   : > { %p910_p1 = scmp.ne.s32.totalorder %s1209_s22, %s909_s28  ;;  %p915_p8 = scmp.lt.u32.totalorder %s1209_s22, %s1369_s1 }
  0x4c   : > { %p916_p2 = scmp.lt.u32.totalorder %s914_s5, %s909_s28  ;;  %p918_p6 = scmp.lt.u32.totalorder %s909_s28, %s1209_s22 }
  0x4d   : > { %p912_p0 = pnand %p910_p1, %p881_p12 }
  0x4e   : > { %p917_p5 = por %p916_p2, %p915_p8 }
  0x4f   : > { %p913_p7 = pneg %p912_p0 }
  0x50   : > { %p919_p9 = por %p918_p6, %p917_p5 }
  0x52   : > { %p920_p11 = pnand %p919_p9, %p913_p7 }
  0x54   : > { %923 = shalt.err (!%p920_p11)
}
  0x55   : > { %s924_s29 = scalar_lea.vmem %s1203_s19, 8192  ;;  %s1031_s30 = smov [#allocation6]  }
  0x56   : > { %p925_p13 = scmp.ne.s32.totalorder %s1203_s19, %s924_s29  ;;  %s929_s26 = sshll.u32 %s1031_s30, 4  ;;  %s930_s26 = int_to_ptr.vmem [resolvable:$false] %s929_s26 }
  0x57   : > { %s931_s9 = scalar_lea.vmem %s930_s26, 16384  ;;  %p932_p1 = scmp.lt.s32.totalorder %s1203_s19, %s930_s26 }
  0x58   : > { %p927_p3 = pnand %p925_p13, %p881_p12  ;;  %p933_p0 = scmp.lt.s32.totalorder %s931_s9, %s924_s29 }
  0x5a   : > { %p928_p4 = pneg %p927_p3  ;;  %p934_p8 = por %p933_p0, %p932_p1 }
  0x5c   : > { %p935_p2 = pnand %p934_p8, %p928_p4 }
  0x5e   : > { %938 = shalt.err (!%p935_p2)
}
  0x5f   : > { %s1032_s27 = smov 128   ;;  %s1033_s10 = smov 8  }
  0x60   : > { %792 = dma.hbm_to_vmem [thread:$0]  (!%p1167_p10), %s1209_s22, 8192, %s1203_s19, %s1211_s24, %s1032_s27, %s1032_s27, %s1033_s10  }
  0x61   : > { %p1384_p12 = scmp.ne.s32.totalorder %s1376_s21, 0 }
  0x62   : > { %s227_s11 = sand.u32 (!%p1384_p12), 1, %s1011_s13   ;;  %p1385_p7 = scmp.ne.s32.totalorder (!%p1384_p12), %s1375_s20, 0 }
  0x63   : > { %225 = sbr.rel (%p1384_p12) target bundleno = 414 (0x19e), region = 32  ;;  %s624_s28 = sshll.u32 (!%p1384_p12), %s227_s11, 5 }
  0x64   : > { %s228_s12 = scalar_lea.sflag (!%p1384_p12), [#allocation4], %s227_s11  ;;  %s1240_s4 = scalar_lea.vmem (!%p1384_p12), [#allocation3], %s624_s28 }
  0x6a   : > { %990 = dma.done.wait (%p1385_p7), %s228_s12, 512  }
  0x6b   : > { %992 = vsyncadd (%p1385_p7), %s228_s12, 4294966784  ;;  %s236_s5 = sand.u32 1, %s1085_s18   ;;  %s625_s6 = sshll.u32 %s227_s11, 9 }
  0x6c   : > { %s237_s19 = scalar_lea.sflag [#allocation7], %s236_s5  ;;  %s1247_s22 = scalar_lea.vmem [#allocation6], %s625_s6 }
  0x6d   : > { %994 = dma.done.wait (%p1385_p7), %s237_s19, 8192  }
  0x6e   : > { %996 = vsyncadd (%p1385_p7), %s237_s19, 4294959104  ;;  %p1386_p10 = scmp.eq.s32.totalorder %s1085_s18, 0 }
  0x70   : > { %998 = dma.done.wait (%p1386_p10), [#allocation7], 16   ;;  %p1387_p5 = pmov %p1386_p10 }
  0x71   : > { %p627_p6 = scmp.ne.s32.totalorder %s1019_s15, 0 }
  0x72   : > { %1000 = vsyncadd (%p1387_p5), [#allocation7], 4294967280  ;;  %v1034_v0 = vmov (!%p627_p6), 0.0  }
  0x73   : > { %272 = sbr.rel (%p627_p6) target bundleno = 122 (0x7a), region = 48  ;;  %273 = vst [vmem:[#allocation2] sm:$0xff] (!%p627_p6), %v1034_v0 }
  0x7a PF: > { %v295_v1 = vld [vmem:[%s1247_s22 + $0x80] sm:$0xff]  ;;  %v296_v2 = vld [vmem:[%s1247_s22 + $0x88] sm:$0xff]  ;;  %v297_v12 = vld [vmem:[%s1247_s22 + $0x90] sm:$0xff]  ;;  %p628_p9 = scmp.ne.s32.totalorder %s1019_s15, 1 }
  0x7b   : > { %v327_v3 = vld [vmem:[%s1247_s22 + $0x180] sm:$0xff]  ;;  %v706_v4 = vpack.c.bf16 %v296_v2, %v295_v1  ;;  %v328_v5 = vld [vmem:[%s1247_s22 + $0x188] sm:$0xff]  ;;  %v298_v14 = vld [vmem:[%s1247_s22 + $0x98] sm:$0xff] }
  0x7c   : > { %v279_v6 = vld [vmem:[%s1247_s22] sm:$0xff]  ;;  %v280_v7 = vld [vmem:[%s1247_s22 + $0x8] sm:$0xff]  ;;  %v738_v8 = vpack.c.bf16 %v328_v5, %v327_v3  ;;  %v329_v15 = vld [vmem:[%s1247_s22 + $0x190] sm:$0xff]  ;;  %v710_v17 = vpack.c.bf16 %v298_v14, %v297_v12 }
  0x7d   : > { %v708_v9 = vpack.c.bf16 %v280_v7, %v279_v6  ;;  %v311_v10 = vld [vmem:[%s1247_s22 + $0x100] sm:$0xff]  ;;  %v312_v11 = vld [vmem:[%s1247_s22 + $0x108] sm:$0xff]  ;;  %707 = vmatprep.subr.bf16.mxu0 %v706_v4  ;;  %v330_v16 = vld [vmem:[%s1247_s22 + $0x198] sm:$0xff] }
  0x7e   : > { %v740_v13 = vpack.c.bf16 %v312_v11, %v311_v10  ;;  %739 = vmatprep.subr.bf16.mxu1 %v738_v8  ;;  %v742_v18 = vpack.c.bf16 %v330_v16, %v329_v15  ;;  %v281_v19 = vld [vmem:[%s1247_s22 + $0x10] sm:$0xff]  ;;  %v282_v20 = vld [vmem:[%s1247_s22 + $0x18] sm:$0xff]  ;;  %v299_v24 = vld [vmem:[%s1247_s22 + $0xa0] sm:$0xff] }
  0x7f   : > { %709 = vmatpush3.bf16.msra.mxu0 %v708_v9  ;;  %v313_v21 = vld [vmem:[%s1247_s22 + $0x110] sm:$0xff]  ;;  %v712_v22 = vpack.c.bf16 %v282_v20, %v281_v19  ;;  %v314_v23 = vld [vmem:[%s1247_s22 + $0x118] sm:$0xff]  ;;  %v300_v25 = vld [vmem:[%s1247_s22 + $0xa8] sm:$0xff] }
  0x80   : > { %741 = vmatpush3.bf16.msra.mxu1 %v740_v13  ;;  %711 = vmatprep.subr.bf16.mxu0 %v710_v17  ;;  %v744_v26 = vpack.c.bf16 %v314_v23, %v313_v21  ;;  %v714_v27 = vpack.c.bf16 %v300_v25, %v299_v24  ;;  %v331_v28 = vld [vmem:[%s1247_s22 + $0x1a0] sm:$0xff]  ;;  %v332_v29 = vld [vmem:[%s1247_s22 + $0x1a8] sm:$0xff]  ;;  %v301_v36 = vld [vmem:[%s1247_s22 + $0xb0] sm:$0xff] }
  0x81   : > { %743 = vmatprep.subr.bf16.mxu1 %v742_v18  ;;  %v283_v30 = vld [vmem:[%s1247_s22 + $0x20] sm:$0xff]  ;;  %v746_v31 = vpack.c.bf16 %v332_v29, %v331_v28  ;;  %v284_v32 = vld [vmem:[%s1247_s22 + $0x28] sm:$0xff]  ;;  %v302_v37 = vld [vmem:[%s1247_s22 + $0xb8] sm:$0xff] }
  0x82   : > { %v315_v33 = vld [vmem:[%s1247_s22 + $0x120] sm:$0xff]  ;;  %v316_v34 = vld [vmem:[%s1247_s22 + $0x128] sm:$0xff]  ;;  %v716_v35 = vpack.c.bf16 %v284_v32, %v283_v30  ;;  %v333_v38 = vld [vmem:[%s1247_s22 + $0x1b0] sm:$0xff]  ;;  %v718_v40 = vpack.c.bf16 %v302_v37, %v301_v36 }
  0x83   : > { %713 = vmatpush3.bf16.msra.mxu0 %v712_v22  ;;  %v748_v39 = vpack.c.bf16 %v316_v34, %v315_v33  ;;  %v334_v41 = vld [vmem:[%s1247_s22 + $0x1b8] sm:$0xff]  ;;  %v285_v42 = vld [vmem:[%s1247_s22 + $0x30] sm:$0xff]  ;;  %v303_v47 = vld [vmem:[%s1247_s22 + $0xc0] sm:$0xff] }
  0x84   : > { %745 = vmatpush3.bf16.msra.mxu1 %v744_v26  ;;  %715 = vmatprep.subr.bf16.mxu0 %v714_v27  ;;  %v286_v43 = vld [vmem:[%s1247_s22 + $0x38] sm:$0xff]  ;;  %v750_v44 = vpack.c.bf16 %v334_v41, %v333_v38  ;;  %v317_v45 = vld [vmem:[%s1247_s22 + $0x130] sm:$0xff]  ;;  %v304_v48 = vld [vmem:[%s1247_s22 + $0xc8] sm:$0xff] }
  0x85   : > { %747 = vmatprep.subr.bf16.mxu1 %v746_v31  ;;  %v318_v46 = vld [vmem:[%s1247_s22 + $0x138] sm:$0xff]  ;;  %v335_v49 = vld [vmem:[%s1247_s22 + $0x1c0] sm:$0xff]  ;;  %v336_v50 = vld [vmem:[%s1247_s22 + $0x1c8] sm:$0xff]  ;;  %v720_v51 = vpack.c.bf16 %v286_v43, %v285_v42  ;;  %v722_v53 = vpack.c.bf16 %v304_v48, %v303_v47 }
  0x86   : > { %v752_v52 = vpack.c.bf16 %v318_v46, %v317_v45  ;;  %v287_v54 = vld [vmem:[%s1247_s22 + $0x40] sm:$0xff]  ;;  %v288_v55 = vld [vmem:[%s1247_s22 + $0x48] sm:$0xff]  ;;  %v754_v57 = vpack.c.bf16 %v336_v50, %v335_v49  ;;  %v305_v59 = vld [vmem:[%s1247_s22 + $0xd0] sm:$0xff] }
  0x87   : > { %717 = vmatpush3.bf16.msra.mxu0 %v716_v35  ;;  %v319_v56 = vld [vmem:[%s1247_s22 + $0x140] sm:$0xff]  ;;  %v320_v58 = vld [vmem:[%s1247_s22 + $0x148] sm:$0xff]  ;;  %v306_v60 = vld [vmem:[%s1247_s22 + $0xd8] sm:$0xff]  ;;  %v724_v63 = vpack.c.bf16 %v288_v55, %v287_v54 }
  0x88   : > { %749 = vmatpush3.bf16.msra.mxu1 %v748_v39  ;;  %719 = vmatprep.subr.bf16.mxu0 %v718_v40  ;;  %v337_v61 = vld [vmem:[%s1247_s22 + $0x1d0] sm:$0xff]  ;;  %v338_v62 = vld [vmem:[%s1247_s22 + $0x1d8] sm:$0xff]  ;;  %v756_v0 = vpack.c.bf16 %v320_v58, %v319_v56  ;;  %v726_v1 = vpack.c.bf16 %v306_v60, %v305_v59  ;;  %v307_v7 = vld [vmem:[%s1247_s22 + $0xe0] sm:$0xff] }
  0x89   : > { %751 = vmatprep.subr.bf16.mxu1 %v750_v44  ;;  %v289_v2 = vld [vmem:[%s1247_s22 + $0x50] sm:$0xff]  ;;  %v290_v3 = vld [vmem:[%s1247_s22 + $0x58] sm:$0xff]  ;;  %v758_v5 = vpack.c.bf16 %v338_v62, %v337_v61  ;;  %v308_v8 = vld [vmem:[%s1247_s22 + $0xe8] sm:$0xff] }
  0x8a   : > { %v321_v4 = vld [vmem:[%s1247_s22 + $0x150] sm:$0xff]  ;;  %v322_v6 = vld [vmem:[%s1247_s22 + $0x158] sm:$0xff]  ;;  %v339_v9 = vld [vmem:[%s1247_s22 + $0x1e0] sm:$0xff]  ;;  %v728_v11 = vpack.c.bf16 %v290_v3, %v289_v2  ;;  %v730_v15 = vpack.c.bf16 %v308_v8, %v307_v7 }
  0x8b   : > { %721 = vmatpush3.bf16.msra.mxu0 %v720_v51  ;;  %v340_v10 = vld [vmem:[%s1247_s22 + $0x1e8] sm:$0xff]  ;;  %v291_v12 = vld [vmem:[%s1247_s22 + $0x60] sm:$0xff]  ;;  %v760_v14 = vpack.c.bf16 %v322_v6, %v321_v4  ;;  %v278_v18 = vld [vmem:[%s1240_s4 + $0x18] sm:$0xff] }
  0x8c   : > { %753 = vmatpush3.bf16.msra.mxu1 %v752_v52  ;;  %723 = vmatprep.subr.bf16.mxu0 %v722_v53  ;;  %v292_v13 = vld [vmem:[%s1247_s22 + $0x68] sm:$0xff]  ;;  %v323_v16 = vld [vmem:[%s1247_s22 + $0x160] sm:$0xff]  ;;  %v762_v19 = vpack.c.bf16 %v340_v10, %v339_v9  ;;  %v309_v21 = vld [vmem:[%s1247_s22 + $0xf0] sm:$0xff] }
  0x8d   : > { %755 = vmatprep.subr.bf16.mxu1 %v754_v57  ;;  %v276_v17 = vld [vmem:[%s1240_s4 + $0x8] sm:$0xff]  ;;  %v310_v22 = vld [vmem:[%s1247_s22 + $0xf8] sm:$0xff]  ;;  %v341_v23 = vld [vmem:[%s1247_s22 + $0x1f0] sm:$0xff]  ;;  %477 = vmatprep.mubr.f32.mxu1 %v278_v18  ;;  %v732_v25 = vpack.c.bf16 %v292_v13, %v291_v12 }
  0x8e   : > { %v324_v20 = vld [vmem:[%s1247_s22 + $0x168] sm:$0xff]  ;;  %407 = vmatprep.mubr.f32.mxu0 %v276_v17  ;;  %v342_v24 = vld [vmem:[%s1247_s22 + $0x1f8] sm:$0xff]  ;;  %v734_v27 = vpack.c.bf16 %v310_v22, %v309_v21  ;;  %v293_v28 = vld [vmem:[%s1247_s22 + $0x70] sm:$0xff] }
  0x8f   : > { %725 = vmatpush3.bf16.msra.mxu0 %v724_v63  ;;  %v764_v26 = vpack.c.bf16 %v324_v20, %v323_v16  ;;  %v294_v29 = vld [vmem:[%s1247_s22 + $0x78] sm:$0xff]  ;;  %v766_v30 = vpack.c.bf16 %v342_v24, %v341_v23  ;;  %v325_v31 = vld [vmem:[%s1247_s22 + $0x170] sm:$0xff]  ;;  %v275_v35 = vld [vmem:[%s1240_s4] sm:$0xff] }
  0x90   : > { %757 = vmatpush3.bf16.msra.mxu1 %v756_v0  ;;  %727 = vmatprep.subr.bf16.mxu0 %v726_v1  ;;  %v326_v32 = vld [vmem:[%s1247_s22 + $0x178] sm:$0xff]  ;;  %v736_v33 = vpack.c.bf16 %v294_v29, %v293_v28  ;;  %v277_v36 = vld [vmem:[%s1240_s4 + $0x10] sm:$0xff]  ;;  %v629_v47 = vld [vmem:[#allocation8] ss:$0 sm:$0xff] (!%p628_p9) }
  0x91   : > { %759 = vmatprep.subr.bf16.mxu1 %v758_v5  ;;  %v768_v34 = vpack.c.bf16 %v326_v32, %v325_v31  ;;  %v274_v43 = vld [vmem:[#allocation2] sm:$0xff] }
  0x93   : > { %729 = vmatpush3.bf16.msra.mxu0 %v728_v11 }
  0x94   : > { %761 = vmatpush3.bf16.msra.mxu1 %v760_v14  ;;  %731 = vmatprep.subr.bf16.mxu0 %v730_v15 }
  0x95   : > { %763 = vmatprep.subr.bf16.mxu1 %v762_v19 }
  0x97   : > { %733 = vmatpush3.bf16.msra.mxu0 %v732_v25 }
  0x98   : > { %765 = vmatpush3.bf16.msra.mxu1 %v764_v26  ;;  %735 = vmatprep.subr.bf16.mxu0 %v734_v27 }
  0x99   : > { %767 = vmatprep.subr.bf16.mxu1 %v766_v30 }
  0x9b   : > { %737 = vmatpush3.bf16.msra.mxu0 %v736_v33 }
  0x9c   : > { %769 = vmatpush3.bf16.msra.mxu1 %v768_v34 }
  0x9e   : > { %408 = vmatmul.mubr.f32.vlgmr.msra.gmra.mrb[0].mxu0 %v275_v35 }
  0x9f   : > { %478 = vmatmul.mubr.f32.vlgmr.msra.gmra.mrb[0].mxu1 %v277_v36 }
 0x171   : > { %v668_v37 = vpop.f32.mrb[0].mxu0 }
 0x172   : > { %v703_v38 = vpop.f32.mrb[0].mxu1  ;;  %v669_v39 = vpop.f32.mrb[1].mxu0 }
 0x173   : > { %v670_v40 = vadd.f32 %v669_v39, %v668_v37  ;;  %v704_v41 = vpop.f32.mrb[1].mxu1 }
 0x174   : > { %v705_v42 = vadd.f32 %v704_v41, %v703_v38  ;;  %488 = sbr.rel (%p628_p9) target bundleno = 389 (0x185), region = 52 }
 0x176   : > { %v480_v44 = vadd.f32 %v705_v42, %v670_v40 }
 0x178   : > { %v483_v45 = vadd.f32 %v480_v44, %v274_v43 }
 0x17a   : > { %484 = vst [vmem:[#allocation2] sm:$0xff] %v483_v45 }
 0x181   : > { %v489_v46 = vld [vmem:[#allocation2] sm:$0xff] }
 0x182   : > { %v497_v48 = vadd.f32 %v629_v47, %v489_v46 }
 0x184   : > { %498 = vst [vmem:[#allocation9] sm:$0xff] %v497_v48 }
 0x185 PF: > { %p796_p11 = scmp.eq.s32.totalorder %s1085_s18, 1  ;;  %s1035_s20 = smov [#allocation9]  }
 0x186   : > { %s509_s21 = sshll.u32 %s1035_s20, 4  ;;  %s510_s21 = int_to_ptr.vmem [resolvable:$true] %s509_s21 }
 0x187   : > { %s939_s24 = scalar_lea.vmem %s510_s21, 128  ;;  %p946_p1 = scmp.lt.s32.totalorder %s510_s21, %s510_s21 }
 0x188   : > { %p940_p13 = scmp.ne.s32.totalorder %s510_s21, %s939_s24  ;;  %p947_p0 = scmp.lt.s32.totalorder %s939_s24, %s939_s24 }
 0x18a   : > { %p941_p3 = pnand %p940_p13, %p796_p11  ;;  %p948_p8 = por %p947_p0, %p946_p1 }
 0x18c   : > { %p942_p4 = pneg %p941_p3 }
 0x18e   : > { %p949_p2 = pnand %p948_p8, %p942_p4 }
 0x190   : > { %952 = shalt.err (!%p949_p2)
}
 0x191   : > { %s953_s8 = scalar_lea.hbm %s1371_s3, 128 }
 0x192   : > { %p954_p12 = scmp.ne.s32.totalorder %s1371_s3, %s953_s8  ;;  %p959_p5 = scmp.lt.u32.totalorder %s953_s8, %s1371_s3 }
 0x194   : > { %p955_p7 = pnand %p954_p12, %p796_p11 }
 0x196   : > { %p956_p10 = pneg %p955_p7 }
 0x198   : > { %p961_p6 = pnand %p959_p5, %p956_p10 }
 0x19a   : > { %964 = shalt.err (!%p961_p6)
}
 0x19b   : > { %779 = dma.vmem_to_hbm [thread:$0]  (%p796_p11), %s510_s21, 128, %s1371_s3, [#allocation5]  }
 0x19c   : > { %1002 = dma.done.wait (%p796_p11), [#allocation5], 128  }
 0x19d   : > { %1004 = vsyncadd (%p796_p11), [#allocation5], 4294967168 }
 0x19e PF: > { %s20_s17 = sadd.s32 1, %s1027_s17   ;;  %s1388_s12 = smov %s1011_s13 }
 0x19f   : > { %p17_p9 = scmp.ge.s32.totalorder %s20_s17, 4   ;;  %s1389_s13 = smov %s1015_s14 }
 0x1a0   : > { %s1390_s14 = smov %s1161_s23  ;;  %s1391_s15 = smov %s1023_s16 }
 0x1a1   : > { %s1392_s16 = smov %s1394_s25  ;;  %19 = sbr.rel (!%p17_p9) target bundleno = 7 (0x7), region = 96 }
 0x1a8   :  { %522 = vsyncpa [#allocation4], 1 }
 0x1a9   :  { %524 = vsyncpa [#allocation4 + $0x1], 1 }
 0x1aa   :  { %525 = vsyncpa [#allocation7], 1 }
 0x1ab   :  { %527 = vsyncpa [#allocation7 + $0x1], 1 }
 0x1ac   :  { %528 = vsyncpa [#allocation5], 1 }
 0x1ad   :  { %530 = vsyncpa [#allocation5 + $0x1], 1 }

</bundles_post_ra>
